<compile_context>
chip_gen: v6e
topology: v6e:2x2x1
jax: 0.10.0
libtpu: 0.0.40
codegen_flags: <defaults>
</compile_context>

<pallas_src>
import functools

import jax
import jax.numpy as jnp
from jax.experimental import pallas as pl
from jax.experimental.pallas import tpu as pltpu


def _balance_l1_kernel(pred_ref, gt_ref, mask_ref,
                       neg_ref, pos_ref, cnt_ref, *, h_total, tile_h):
    i = pl.program_id(1)        # inner H-tile axis (reduction for the scalars)

    # Per-batch accumulator blocks are VMEM-resident across the inner axis:
    # zero them at the first inner step of every batch row.
    @pl.when(i == 0)
    def _init():
        pos_ref[...] = jnp.zeros_like(pos_ref)
        cnt_ref[...] = jnp.zeros_like(cnt_ref)

    p = pred_ref[...].astype(jnp.float32)
    g = gt_ref[...].astype(jnp.float32)
    m = mask_ref[...].astype(jnp.float32)

    loss = jnp.abs(p - g)              # elementwise L1
    positive = loss * m
    negative = loss * (1.0 - m)        # exact zeros at positive positions

    # Full-tile store; Pallas clips out-of-bounds rows of a ragged tail block.
    neg_ref[...] = negative.astype(neg_ref.dtype)

    if h_total % tile_h != 0:
        # Ragged tail tile: rows >= h_total hold garbage -> exclude from sums.
        rows = jax.lax.broadcasted_iota(jnp.int32, positive.shape, 0)
        valid = (i * tile_h + rows) < h_total
        positive = jnp.where(valid, positive, 0.0)
        m = jnp.where(valid, m, 0.0)

    pos_ref[...] += jnp.sum(positive).reshape(1, 1)
    # int32 count: exact for binary masks regardless of N*H*W (no f32 2^24 cap).
    cnt_ref[...] += jnp.sum(m).astype(jnp.int32).reshape(1, 1)


def balance_l1_loss(pred, gt, mask, negative_ratio=1.0):
    """pred: (N,1,H,W), gt: (N,H,W), mask: (N,H,W) -> (total_loss, dict). Jittable."""
    N, C, H, W = pred.shape
    assert C == 1
    assert gt.shape == (N, H, W) and mask.shape == (N, H, W)
    total = N * H * W

    # Generation-aware sizing (v7x: 64 MiB VMEM/TC; v5e/v6e: 128 MiB).
    try:
        vmem_cap = int(pltpu.get_tpu_info().vmem_capacity_bytes)
    except Exception:  # conservative fallback if query is unavailable
        vmem_cap = 64 << 20
    target_tile_bytes = (4 << 20) if vmem_cap > (64 << 20) else (2 << 20)

    # H-tile: largest multiple-of-8 row count whose f32 tile fits the target.
    rows_budget = max(8, (target_tile_bytes // max(4 * W, 1)) // 8 * 8)
    if H <= rows_budget:
        tile_h, n_h = H, 1                       # full-H block (always legal)
    else:
        tile_h, n_h = rows_budget, pl.cdiv(H, rows_budget)

    # 3 inputs + 1 tiled output, double-buffered, + headroom; keep >= half of
    # physical VMEM free so the cap is valid on every generation.
    tile_bytes = tile_h * W * 4
    vmem_limit = min(max(8 * tile_bytes + (4 << 20), 16 << 20), vmem_cap // 2)

    pred3 = pred[:, 0]   # unit-dim squeeze: layout-preserving, no data movement

    kernel = functools.partial(_balance_l1_kernel, h_total=H, tile_h=tile_h)

    negative, pos_part, cnt_part = pl.pallas_call(
        kernel,
        grid=(N, n_h),
        out_shape=(
            jax.ShapeDtypeStruct((N, H, W), pred.dtype),    # negative map
            jax.ShapeDtypeStruct((N, 1, 1), jnp.float32),   # per-batch sum(positive)
            jax.ShapeDtypeStruct((N, 1, 1), jnp.int32),     # per-batch sum(mask)
        ),
        in_specs=[
            pl.BlockSpec((None, tile_h, W), lambda n, i: (n, i, 0)),   # pred[:,0]
            pl.BlockSpec((None, tile_h, W), lambda n, i: (n, i, 0)),   # gt
            pl.BlockSpec((None, tile_h, W), lambda n, i: (n, i, 0)),   # mask
        ],
        out_specs=(
            pl.BlockSpec((None, tile_h, W), lambda n, i: (n, i, 0)),
            pl.BlockSpec((None, 1, 1), lambda n, i: (n, 0, 0)),
            pl.BlockSpec((None, 1, 1), lambda n, i: (n, 0, 0)),
        ),
        compiler_params=pltpu.CompilerParams(
            # Outer batch axis shards across TensorCores (v7x megacore); every n
            # owns distinct output/accumulator blocks, so "parallel" is race-free.
            # Inner H-tile axis is the reduction -> "arbitrary".
            dimension_semantics=("parallel", "arbitrary"),
            vmem_limit_bytes=vmem_limit,
        ),
    )(pred3, gt, mask)

    pos_sum = jnp.sum(pos_part)             # f32 scalar
    positive_count = jnp.sum(cnt_part)      # int32 scalar (exact for binary masks)

    pc_f = positive_count.astype(jnp.float32)
    # torch: min(int((1-mask).sum()), int(positive_count * negative_ratio))
    ratio_count = jnp.floor(pc_f * jnp.float32(negative_ratio)).astype(jnp.int32)
    negative_count = jnp.minimum(jnp.int32(total) - positive_count, ratio_count)

    # TODO(synk): the data-dependent-size top-k has no clean Pallas equivalent;
    # it is done on-device as a static-shape ascending sort + rank mask (the sum
    # of the top-k values is tie-break independent), which removes the blocking
    # host fetch of the previous version and keeps the whole loss jittable.
    neg_sorted = jnp.sort(negative.reshape(-1).astype(jnp.float32))
    keep = jnp.arange(total, dtype=jnp.int32) >= (total - negative_count)
    negative_sum = jnp.sum(jnp.where(keep, neg_sorted, 0.0))

    # No eps guards, matching the reference (NaN/Inf if a count is zero).
    negative_loss = negative_sum / negative_count.astype(jnp.float32)
    positive_loss = pos_sum / pc_f
    total_loss = positive_loss + negative_loss
    return total_loss, dict(l1_loss=positive_loss, nge_l1_loss=negative_loss)


def _reference(pred, gt, mask, negative_ratio=1.0):
    """Pure-JAX mirror of the PyTorch module (concrete counts, lax.top_k)."""
    loss = jnp.abs(pred[:, 0] - gt)
    positive = loss * mask
    negative = loss * (1.0 - mask)
    positive_count = int(jnp.sum(mask))
    negative_count = min(int(jnp.sum(1.0 - mask)),
                         int(positive_count * negative_ratio))
    neg_vals, _ = jax.lax.top_k(negative.reshape(-1), negative_count)
    negative_loss = jnp.sum(neg_vals) / negative_count
    positive_loss = jnp.sum(positive) / positive_count
    return positive_loss + negative_loss, positive_loss, negative_loss


if __name__ == "__main__":
    key = jax.random.PRNGKey(0)
    k1, k2, k3 = jax.random.split(key, 3)

    N, H, W = 2, 16, 16
    pred = jax.random.normal(k1, (N, 1, H, W), dtype=jnp.float32)
    gt = jax.random.normal(k2, (N, H, W), dtype=jnp.float32)
    # binary mask with both positives and negatives present
    mask = jax.random.bernoulli(k3, p=0.3, shape=(N, H, W)).astype(jnp.float32)

    loss_fn = jax.jit(lambda p, g, m: balance_l1_loss(p, g, m, negative_ratio=1.0))
    total, metrics = loss_fn(pred, gt, mask)
    total = jax.block_until_ready(total)
    l1 = jax.block_until_ready(metrics["l1_loss"])
    nge = jax.block_until_ready(metrics["nge_l1_loss"])

    ref_total, ref_pos, ref_neg = _reference(pred, gt, mask)
    assert jnp.allclose(total, ref_total, rtol=1e-5, atol=1e-5)
    assert jnp.allclose(l1, ref_pos, rtol=1e-5, atol=1e-5)
    assert jnp.allclose(nge, ref_neg, rtol=1e-5, atol=1e-5)

    print("KERNEL_OK")
</pallas_src>

<mosaic_0001>
module attributes {stable_mosaic.version = 11 : i64} {
  func.func @_balance_l1_kernel(%arg0: i32, %arg1: i32, %arg2: memref<1x16x16xf32, #tpu.memory_space<vmem>>, %arg3: memref<1x16x16xf32, #tpu.memory_space<vmem>>, %arg4: memref<1x16x16xf32, #tpu.memory_space<vmem>>, %arg5: memref<1x16x16xf32, #tpu.memory_space<vmem>>, %arg6: memref<1x1x1xf32, #tpu.memory_space<vmem>>, %arg7: memref<1x1x1xi32, #tpu.memory_space<vmem>>) attributes {dimension_semantics = [#tpu.dimension_semantics<parallel>, #tpu.dimension_semantics<arbitrary>], iteration_bounds = array<i64: 2, 1>, scalar_prefetch = 0 : i64, scratch_operands = 0 : i64, tpu.core_type = #tpu.core_type<tc>, window_params = [{transform_indices = @transform_0, window_bounds = array<i64: 1, 16, 16>}, {transform_indices = @transform_1, window_bounds = array<i64: 1, 16, 16>}, {transform_indices = @transform_2, window_bounds = array<i64: 1, 16, 16>}, {transform_indices = @transform_3, window_bounds = array<i64: 1, 16, 16>}, {transform_indices = @transform_4, window_bounds = array<i64: 1, 1, 1>}, {transform_indices = @transform_5, window_bounds = array<i64: 1, 1, 1>}]} {
    %c0_i32 = arith.constant 0 : i32
    %0 = arith.cmpi eq, %arg1, %c0_i32 : i32
    %1 = arith.extui %0 : i1 to i32
    %c0_i32_0 = arith.constant 0 : i32
    %2 = arith.cmpi ne, %1, %c0_i32_0 : i32
    scf.if %2 {
      %cst_26 = arith.constant 0.000000e+00 : f32
      %41 = vector.broadcast %cst_26 : f32 to vector<1x1xf32>
      %c0_27 = arith.constant 0 : index
      %c0_28 = arith.constant 0 : index
      %c0_29 = arith.constant 0 : index
      %42 = vector.load %arg6[%c0_27, %c0_28, %c0_29] : memref<1x1x1xf32, #tpu.memory_space<vmem>>, vector<1x1x1xf32>
      %43 = vector.shape_cast %42 : vector<1x1x1xf32> to vector<1x1xf32>
      %44 = vector.shape_cast %41 : vector<1x1xf32> to vector<1x1x1xf32>
      tpu.vector_store %arg6[%c0_27, %c0_28, %c0_29], %44 {strides = array<i32>} : memref<1x1x1xf32, #tpu.memory_space<vmem>>, vector<1x1x1xf32>,
      %c0_i32_30 = arith.constant 0 : i32
      %45 = vector.broadcast %c0_i32_30 : i32 to vector<1x1xi32>
      %c0_31 = arith.constant 0 : index
      %c0_32 = arith.constant 0 : index
      %c0_33 = arith.constant 0 : index
      %46 = vector.load %arg7[%c0_31, %c0_32, %c0_33] : memref<1x1x1xi32, #tpu.memory_space<vmem>>, vector<1x1x1xi32>
      %47 = vector.shape_cast %46 : vector<1x1x1xi32> to vector<1x1xi32>
      %48 = vector.shape_cast %45 : vector<1x1xi32> to vector<1x1x1xi32>
      tpu.vector_store %arg7[%c0_31, %c0_32, %c0_33], %48 {strides = array<i32>} : memref<1x1x1xi32, #tpu.memory_space<vmem>>, vector<1x1x1xi32>,
    } else {
    }
    %c0 = arith.constant 0 : index
    %c0_1 = arith.constant 0 : index
    %c0_2 = arith.constant 0 : index
    %3 = vector.load %arg2[%c0, %c0_1, %c0_2] : memref<1x16x16xf32, #tpu.memory_space<vmem>>, vector<1x16x16xf32>
    %4 = vector.shape_cast %3 : vector<1x16x16xf32> to vector<16x16xf32>
    %c0_3 = arith.constant 0 : index
    %c0_4 = arith.constant 0 : index
    %c0_5 = arith.constant 0 : index
    %5 = vector.load %arg3[%c0_3, %c0_4, %c0_5] : memref<1x16x16xf32, #tpu.memory_space<vmem>>, vector<1x16x16xf32>
    %6 = vector.shape_cast %5 : vector<1x16x16xf32> to vector<16x16xf32>
    %c0_6 = arith.constant 0 : index
    %c0_7 = arith.constant 0 : index
    %c0_8 = arith.constant 0 : index
    %7 = vector.load %arg4[%c0_6, %c0_7, %c0_8] : memref<1x16x16xf32, #tpu.memory_space<vmem>>, vector<1x16x16xf32>
    %8 = vector.shape_cast %7 : vector<1x16x16xf32> to vector<16x16xf32>
    %9 = arith.subf %4, %6 : vector<16x16xf32>
    %10 = math.absf %9 : vector<16x16xf32>
    %11 = arith.mulf %10, %8 : vector<16x16xf32>
    %cst = arith.constant 1.000000e+00 : f32
    %12 = vector.broadcast %cst : f32 to vector<16x16xf32>
    %13 = arith.subf %12, %8 : vector<16x16xf32>
    %14 = arith.mulf %10, %13 : vector<16x16xf32>
    %c0_9 = arith.constant 0 : index
    %c0_10 = arith.constant 0 : index
    %c0_11 = arith.constant 0 : index
    %15 = vector.load %arg5[%c0_9, %c0_10, %c0_11] : memref<1x16x16xf32, #tpu.memory_space<vmem>>, vector<1x16x16xf32>
    %16 = vector.shape_cast %15 : vector<1x16x16xf32> to vector<16x16xf32>
    %17 = vector.shape_cast %14 : vector<16x16xf32> to vector<1x16x16xf32>
    tpu.vector_store %arg5[%c0_9, %c0_10, %c0_11], %17 {strides = array<i32>} : memref<1x16x16xf32, #tpu.memory_space<vmem>>, vector<1x16x16xf32>,
    %c0_12 = arith.constant 0 : index
    %c0_13 = arith.constant 0 : index
    %c0_14 = arith.constant 0 : index
    %18 = vector.load %arg6[%c0_12, %c0_13, %c0_14] : memref<1x1x1xf32, #tpu.memory_space<vmem>>, vector<1x1x1xf32>
    %19 = vector.shape_cast %18 : vector<1x1x1xf32> to vector<1x1xf32>
    %20 = vector.shape_cast %11 : vector<16x16xf32> to vector<1x16x16xf32>
    %cst_15 = arith.constant dense<0.000000e+00> : vector<1xf32>
    %21 = vector.multi_reduction <add>, %20, %cst_15 [1, 2] : vector<1x16x16xf32> to vector<1xf32>
    %22 = vector.shape_cast %21 : vector<1xf32> to vector<1x1x1xf32>
    %23 = vector.extract %22[0, 0, 0] : f32 from vector<1x1x1xf32>
    %24 = vector.broadcast %23 : f32 to vector<1x1xf32>
    %25 = arith.addf %19, %24 : vector<1x1xf32>
    %c0_16 = arith.constant 0 : index
    %c0_17 = arith.constant 0 : index
    %c0_18 = arith.constant 0 : index
    %26 = vector.load %arg6[%c0_16, %c0_17, %c0_18] : memref<1x1x1xf32, #tpu.memory_space<vmem>>, vector<1x1x1xf32>
    %27 = vector.shape_cast %26 : vector<1x1x1xf32> to vector<1x1xf32>
    %28 = vector.shape_cast %25 : vector<1x1xf32> to vector<1x1x1xf32>
    tpu.vector_store %arg6[%c0_16, %c0_17, %c0_18], %28 {strides = array<i32>} : memref<1x1x1xf32, #tpu.memory_space<vmem>>, vector<1x1x1xf32>,
    %c0_19 = arith.constant 0 : index
    %c0_20 = arith.constant 0 : index
    %c0_21 = arith.constant 0 : index
    %29 = vector.load %arg7[%c0_19, %c0_20, %c0_21] : memref<1x1x1xi32, #tpu.memory_space<vmem>>, vector<1x1x1xi32>
    %30 = vector.shape_cast %29 : vector<1x1x1xi32> to vector<1x1xi32>
    %31 = vector.shape_cast %8 : vector<16x16xf32> to vector<1x16x16xf32>
    %cst_22 = arith.constant dense<0.000000e+00> : vector<1xf32>
    %32 = vector.multi_reduction <add>, %31, %cst_22 [1, 2] : vector<1x16x16xf32> to vector<1xf32>
    %33 = vector.shape_cast %32 : vector<1xf32> to vector<1x1x1xf32>
    %34 = vector.extract %33[0, 0, 0] : f32 from vector<1x1x1xf32>
    %35 = arith.fptosi %34 : f32 to i32
    %36 = vector.broadcast %35 : i32 to vector<1x1xi32>
    %37 = arith.addi %30, %36 : vector<1x1xi32>
    %c0_23 = arith.constant 0 : index
    %c0_24 = arith.constant 0 : index
    %c0_25 = arith.constant 0 : index
    %38 = vector.load %arg7[%c0_23, %c0_24, %c0_25] : memref<1x1x1xi32, #tpu.memory_space<vmem>>, vector<1x1x1xi32>
    %39 = vector.shape_cast %38 : vector<1x1x1xi32> to vector<1x1xi32>
    %40 = vector.shape_cast %37 : vector<1x1xi32> to vector<1x1x1xi32>
    tpu.vector_store %arg7[%c0_23, %c0_24, %c0_25], %40 {strides = array<i32>} : memref<1x1x1xi32, #tpu.memory_space<vmem>>, vector<1x1x1xi32>,
    return
  }
  func.func @transform_0(%arg0: i32, %arg1: i32) -> (i32, i32, i32) {
    %c0_i32 = arith.constant 0 : i32
    %c0_i32_0 = arith.constant 0 : i32
    return %arg0, %arg1, %c0_i32 : i32, i32, i32
  }
  func.func @transform_1(%arg0: i32, %arg1: i32) -> (i32, i32, i32) {
    %c0_i32 = arith.constant 0 : i32
    %c0_i32_0 = arith.constant 0 : i32
    return %arg0, %arg1, %c0_i32 : i32, i32, i32
  }
  func.func @transform_2(%arg0: i32, %arg1: i32) -> (i32, i32, i32) {
    %c0_i32 = arith.constant 0 : i32
    %c0_i32_0 = arith.constant 0 : i32
    return %arg0, %arg1, %c0_i32 : i32, i32, i32
  }
  func.func @transform_3(%arg0: i32, %arg1: i32) -> (i32, i32, i32) {
    %c0_i32 = arith.constant 0 : i32
    %c0_i32_0 = arith.constant 0 : i32
    return %arg0, %arg1, %c0_i32 : i32, i32, i32
  }
  func.func @transform_4(%arg0: i32, %arg1: i32) -> (i32, i32, i32) {
    %c0_i32 = arith.constant 0 : i32
    %c0_i32_0 = arith.constant 0 : i32
    %c0_i32_1 = arith.constant 0 : i32
    return %arg0, %c0_i32, %c0_i32_0 : i32, i32, i32
  }
  func.func @transform_5(%arg0: i32, %arg1: i32) -> (i32, i32, i32) {
    %c0_i32 = arith.constant 0 : i32
    %c0_i32_0 = arith.constant 0 : i32
    %c0_i32_1 = arith.constant 0 : i32
    return %arg0, %c0_i32, %c0_i32_0 : i32, i32, i32
  }
}

</mosaic_0001>

<bundles_post_ra>
// kernel: _lambda_.1
= control target key start
LH: loop header
LB: loop body
LE: loop exit
PB: predicated region body
PF: predicated region fallthrough
CT: control target
= control target key end

     0   :  { %s1085_s0 = inlined_call_operand.hbm [shape: f32[2,16,16], index: 0, kind: input, shape index: {}]   ;;  %s1086_s1 = inlined_call_operand.hbm [shape: f32[2,16,16], index: 1, kind: input, shape index: {}]   ;;  %s1087_s2 = inlined_call_operand.hbm [shape: f32[2,16,16], index: 2, kind: input, shape index: {}]   ;;  %s1088_s3 = inlined_call_operand.vmem [shape: f32[2,16,16], index: 3, kind: output, shape index: {0}]   ;;  %s1089_s4 = inlined_call_operand.vmem [shape: f32[2,1,1], index: 4, kind: output, shape index: {1}]   ;;  %s1090_s5 = inlined_call_operand.vmem [shape: s32[2,1,1], index: 5, kind: output, shape index: {2}]  }
   0x1   :  { %1094 = sst [smem:[#allocation9_spill]] %s1085_s0 }
   0x2   :  { %1095 = sst [smem:[#allocation10_spill]] %s1086_s1 }
   0x3   :  { %11 = vsyncpa [#allocation3], 0 }
   0x4   :  { %13 = vsyncpa [#allocation3 + $0x1], 0 }
   0x5   :  { %14 = vsyncpa [#allocation5], 0 }
   0x6   :  { %16 = vsyncpa [#allocation5 + $0x1], 0  ;;  %s911_s18 = smov 0   ;;  %s913_s19 = smov 0  }
   0x7   :  { %s915_s20 = smov 0   ;;  %s917_s21 = smov 0  }
   0x8   :  { %s919_s22 = smov 0   ;;  %s921_s23 = smov 0  }
   0x9 LB: > { %s1091_s24 = sadd.s32 4294967295, %s872_s23   ;;  %s34_s25 = sadd.s32 1, %s868_s22  ;;  %s872_s23 = sphi %s921_s23, %s22_s23   ;;  %s868_s22 = sphi %s919_s22, %s1107_s22   ;;  %s864_s21 = sphi %s917_s21, %s1106_s21   ;;  %s860_s20 = sphi %s915_s20, %s1105_s20   ;;  %s856_s19 = sphi %s913_s19, %s1104_s19   ;;  %s852_s18 = sphi %s911_s18, %s1103_s18  }
   0xa   : > { %p36_p0 = scmp.ge.s32.totalorder %s34_s25, 2  ;;  %s43_s26 = sadd.s32 1, %s860_s20 }
   0xb   : > { %p50_p1 = scmp.ne.s32.totalorder %s860_s20, %s856_s19  ;;  %p51_p2 = scmp.eq.s32.totalorder %s872_s23, 0 }
   0xc   : > { %s1109_s25 = smov (%p36_p0, %s34_s25), 0  ;;  %p56_p4 = scmp.ne.s32.totalorder %s856_s19, %s852_s18 }
   0xd   : > { %p52_p3 = por %p51_p2, %p50_p1  ;;  %s38_s27 = ssub.s32 %s868_s22, %s1109_s25 }
   0xe   : > { %p57_p5 = scmp.eq.s32.totalorder %s1091_s24, 0  ;;  %p41_p6 = scmp.eq.s32.totalorder %s38_s27, 0 }
   0xf   : > { %p681_p8 = scmp.lt.s32.totalorder %s872_s23, 2  ;;  %s216_s30 = sand.u32 1, %s860_s20  }
  0x10   : > { %p952_p7 = por %p57_p5, %p56_p4  ;;  %s962_s6 = sshll.u32 %s868_s22, 8 }
  0x11   : > { %s958_s29 = scalar_select %p41_p6, %s860_s20, %s43_s26  }
  0x12   : > { %s966_s7 = sshll.u32 %s216_s30, 4  ;;  %p968_p9 = pnand %p681_p8, %p52_p3 }
  0x13   : > { %s239_s9 = sand.u32 1, %s872_s23   ;;  %s1098_s1 = sld [smem:[#allocation10_spill]] }
  0x14   : > { %s243_s13 = scalar_lea.vmem [#allocation4], %s966_s7  ;;  %p644_p10 = scmp.ge.s32.totalorder %s872_s23, 1 }
  0x15   : > { %s252_s14 = sshll.u32 %s243_s13, 4  ;;  %s979_s15 = scalar_lea.sflag [#allocation5], %s239_s9  ;;  %s253_s14 = int_to_ptr.vmem [resolvable:$true] %s252_s14 }
  0x16   : > { %p736_p11 = pneg %p968_p9  ;;  %s747_s16 = scalar_lea.vmem %s253_s14, 256 }
  0x17   : > { %p748_p12 = scmp.ne.s32.totalorder %s253_s14, %s747_s16  ;;  %s874_s17 = smov [#allocation4]  }
  0x18   : > { %s752_s18 = sshll.u32 %s874_s17, 4  ;;  %s753_s18 = int_to_ptr.vmem [resolvable:$false] %s752_s18 }
  0x19   : > { %s251_s12 = scalar_lea.hbm %s1098_s1, %s962_s6  ;;  %p750_p13 = pnand %p748_p12, %p736_p11 }
  0x1a   : > { %s754_s26 = scalar_lea.vmem %s753_s18, 512  ;;  %p755_p1 = scmp.lt.s32.totalorder %s253_s14, %s753_s18 }
  0x1b   : > { %p751_p0 = pneg %p750_p13  ;;  %p756_p2 = scmp.lt.s32.totalorder %s754_s26, %s747_s16 }
  0x1d   : > { %p757_p3 = por %p756_p2, %p755_p1 }
  0x1f   : > { %p758_p4 = pnand %p757_p3, %p751_p0 }
  0x21   : > { %761 = shalt.err (!%p758_p4)
}
  0x22   : > { %s1092_s27 = smov 128   ;;  %s876_s9 = smov 8  }
  0x23   : > { %677 = dma.hbm_to_vmem [thread:$0]  (!%p968_p9), %s251_s12, 256, %s253_s14, %s979_s15, %s1092_s27, %s1092_s27, %s876_s9  }
  0x24   : > { %p283_p5 = scmp.lt.s32.totalorder %s872_s23, 3  ;;  %s1100_s0 = sld [smem:[#allocation9_spill]] }
  0x25   : > { %s220_s17 = scalar_lea.vmem [#allocation2], %s966_s7  ;;  %s217_s26 = scalar_lea.sflag [#allocation3], %s216_s30 }
  0x26   : > { %p995_p6 = pnand %p644_p10, %p283_p5  ;;  %s229_s18 = sshll.u32 %s220_s17, 4  ;;  %s230_s18 = int_to_ptr.vmem [resolvable:$true] %s229_s18 }
  0x27   : > { %s775_s24 = scalar_lea.vmem %s230_s18, 256  ;;  %s877_s12 = smov [#allocation2]  }
  0x28   : > { %p776_p8 = scmp.ne.s32.totalorder %s230_s18, %s775_s24  ;;  %s780_s14 = sshll.u32 %s877_s12, 4  ;;  %s781_s14 = int_to_ptr.vmem [resolvable:$false] %s780_s14 }
  0x29   : > { %s782_s27 = scalar_lea.vmem %s781_s14, 512  ;;  %p783_p10 = scmp.lt.s32.totalorder %s230_s18, %s781_s14 }
  0x2a   : > { %s228_s16 = scalar_lea.hbm %s1100_s0, %s962_s6  ;;  %p778_p12 = pnand %p776_p8, %p736_p11 }
  0x2b   : > { %p784_p0 = scmp.lt.s32.totalorder %s782_s27, %s775_s24 }
  0x2c   : > { %p779_p13 = pneg %p778_p12 }
  0x2d   : > { %p785_p1 = por %p784_p0, %p783_p10 }
  0x2f   : > { %p786_p2 = pnand %p785_p1, %p779_p13 }
  0x31   : > { %789 = shalt.err (!%p786_p2)
}
  0x32   : > { %s1101_s11 = smov 128   ;;  %s274_s17 = scalar_lea.hbm %s1087_s2, %s962_s6 }
  0x33   : > { %674 = dma.hbm_to_vmem [thread:$0]  (!%p968_p9), %s228_s16, 256, %s230_s18, %s217_s26, %s1101_s11, %s1101_s11, %s876_s9  }
  0x34   : > { %s266_s12 = scalar_lea.vmem [#allocation6], %s966_s7  ;;  %s878_s27 = smov [#allocation6]  }
  0x35   : > { %s275_s0 = sshll.u32 %s266_s12, 4  ;;  %s808_s14 = sshll.u32 %s878_s27, 4  ;;  %s276_s0 = int_to_ptr.vmem [resolvable:$true] %s275_s0  ;;  %s809_s14 = int_to_ptr.vmem [resolvable:$false] %s808_s14 }
  0x36   : > { %s803_s24 = scalar_lea.vmem %s276_s0, 256  ;;  %s810_s1 = scalar_lea.vmem %s809_s14, 512 }
  0x37   : > { %p804_p3 = scmp.ne.s32.totalorder %s276_s0, %s803_s24  ;;  %p811_p8 = scmp.lt.s32.totalorder %s276_s0, %s809_s14 }
  0x38   : > { %p812_p12 = scmp.lt.s32.totalorder %s810_s1, %s803_s24 }
  0x39   : > { %p806_p4 = pnand %p804_p3, %p736_p11 }
  0x3a   : > { %p813_p13 = por %p812_p12, %p811_p8 }
  0x3b   : > { %p807_p5 = pneg %p806_p4 }
  0x3d   : > { %p814_p10 = pnand %p813_p13, %p807_p5 }
  0x3f   : > { %817 = shalt.err (!%p814_p10)
}
  0x40   : > { %680 = dma.hbm_to_vmem [thread:$0]  (!%p968_p9), %s274_s17, 256, %s276_s0, %s979_s15, %s1101_s11, %s1101_s11, %s876_s9  }
  0x41   : > { %287 = sbr.rel (%p995_p6) target bundleno = 299 (0x12b), region = 32  ;;  %s289_s6 = sand.u32 (!%p995_p6), 1, %s856_s19  }
  0x42   : > { %s645_s7 = sshll.u32 (!%p995_p6), %s289_s6, 4  ;;  %s290_s16 = scalar_lea.sflag (!%p995_p6), [#allocation3], %s289_s6 }
  0x43   : > { %s293_s18 = scalar_lea.vmem (!%p995_p6), [#allocation2], %s645_s7 }
  0x46   : > { %843 = dma.done.wait (%p952_p7), %s290_s16, 256  }
  0x47   : > { %845 = vsyncadd (%p952_p7), %s290_s16, 4294967040  ;;  %s1102_s1 = sadd.s32 4294967295, %s872_s23   ;;  %s302_s0 = scalar_lea.vmem [#allocation4], %s645_s7 }
  0x48   : > { %s298_s8 = sand.u32 1, %s1102_s1  }
  0x49   : > { %s299_s26 = scalar_lea.sflag [#allocation5], %s298_s8 }
  0x4a   : > { %847 = dma.done.wait (%p952_p7), %s299_s26, 512  }
  0x4b   : > { %849 = vsyncadd (%p952_p7), %s299_s26, 4294966784  ;;  %v384_v0 = vld [vmem:[%s293_s18] sm:$0xff]  ;;  %v385_v1 = vld [vmem:[%s293_s18 + $0x8] sm:$0xff]  ;;  %s311_s15 = scalar_lea.vmem [#allocation6], %s645_s7  ;;  %vm400_vm0 = vcmask 130048   ;;  %p362_p7 = scmp.lt.s32.totalorder %s864_s21, 1 }
  0x4c   : > { %v386_v2 = vld [vmem:[%s302_s0] sm:$0xff]  ;;  %v387_v3 = vld [vmem:[%s302_s0 + $0x8] sm:$0xff]  ;;  %vm381_vm1 = vcmask 0   ;;  %v879_v22 = vmov 0.0   ;;  %v880_v23 = vmov 0  }
  0x4d   : > { %v390_v4 = vsub.f32 %v384_v0, %v386_v2  ;;  %v388_v5 = vld [vmem:[%s311_s15] sm:$0xff]  ;;  %v391_v6 = vsub.f32 %v385_v1, %v387_v3  ;;  %v389_v7 = vld [vmem:[%s311_s15 + $0x8] sm:$0xff]  ;;  %s1111_s21 = smov (!%p362_p7, %s864_s21), 1 }
  0x4e   : > { %v421_v14 = vsel %vm400_vm0, %v388_v5, 0.0  ;;  %v422_v15 = vsel %vm400_vm0, %v389_v7, 0.0  ;;  %v396_v18 = vsub.f32 1.0, %v388_v5  ;;  %v397_v19 = vsub.f32 1.0, %v389_v7  ;;  %s655_s28 = sshll.u32 %s1111_s21, 4  ;;  %s373_s11 = scalar_lea.vmem %s1089_s4, %s1111_s21 }
  0x4f   : > { %v392_v8 = vand.u32 2147483647, %v390_v4  ;;  %v393_v9 = vand.u32 2147483647, %v391_v6  ;;  %v423_v17 = vadd.f32 %v422_v15, %v421_v14  ;;  %s369_s17 = scalar_lea.vmem %s1088_s3, %s655_s28  ;;  %382 = vst.msk [vmem:[%s373_s11] sm:$0x1] %vm381_vm1, %v879_v22  ;;  %s1059_s27 = scalar_lea.vmem %s1090_s5, %s1111_s21 }
  0x50   : > { %383 = vst.msk [vmem:[%s1059_s27] sm:$0x1] %vm381_vm1, %v880_v23 }
  0x51   : > { %v394_v10 = vmul.f32 %v392_v8, %v388_v5  ;;  %v395_v11 = vmul.f32 %v393_v9, %v389_v7  ;;  %v398_v20 = vmul.f32 %v396_v18, %v392_v8  ;;  %v399_v21 = vmul.f32 %v397_v19, %v393_v9 }
  0x53   : > { %v404_v12 = vsel %vm400_vm0, %v394_v10, 0.0  ;;  %v405_v13 = vsel %vm400_vm0, %v395_v11, 0.0  ;;  %401 = vst.msk [vmem:[%s369_s17] sm:$0xff] %vm400_vm0, %v398_v20  ;;  %402 = vst.msk [vmem:[%s369_s17 + $0x8] sm:$0xff] %vm400_vm0, %v399_v21 }
  0x54   : > { %v406_v16 = vadd.f32 %v405_v13, %v404_v12 }
  0x56   : > { %407 = vadd.xlane.f32.xlu0 %v406_v16  ;;  %v403_v38 = vld [vmem:[%s373_s11] sm:$0x1] }
  0x57   : > { %v420_v41 = vld [vmem:[%s1059_s27] sm:$0x1] }
  0x5a   : > { %424 = vadd.xlane.f32.xlu0 %v423_v17 }
  0xdf   : > { %v408_v24 = vpop.xlane.xlu0 %407 }
  0xe0   : > { %v409_v25 = vrot.slane %v408_v24, 4 }
  0xe2   : > { %v410_v26 = vadd.f32 %v409_v25, %v408_v24 }
  0xe3   : > { %v425_v27 = vpop.xlane.xlu0 %424 }
  0xe4   : > { %v411_v28 = vrot.slane %v410_v26, 2  ;;  %v426_v29 = vrot.slane %v425_v27, 4 }
  0xe6   : > { %v427_v30 = vadd.f32 %v426_v29, %v425_v27  ;;  %v412_v31 = vadd.f32 %v411_v28, %v410_v26 }
  0xe8   : > { %v428_v32 = vrot.slane %v427_v30, 2  ;;  %v413_v33 = vrot.slane %v412_v31, 1 }
  0xea   : > { %v429_v34 = vadd.f32 %v428_v32, %v427_v30  ;;  %v414_v35 = vadd.f32 %v413_v33, %v412_v31 }
  0xec   : > { %656 = vpush %v414_v35  ;;  %v430_v36 = vrot.slane %v429_v34, 1 }
  0xee   : > { %v431_v37 = vadd.f32 %v430_v36, %v429_v34 }
  0xf0   : > { %658 = vpush %v431_v37 }
 0x11d   : > { %s657_s21 = spop %656 }
 0x11e   : > { %v416_v39 = vstv %s657_s21 }
 0x11f   : > { %v417_v40 = vadd.f32 %v416_v39, %v403_v38 }
 0x121   : > { %419 = vst.msk [vmem:[%s373_s11] sm:$0x1] %vm381_vm1, %v417_v40  ;;  %s659_s14 = spop %658 }
 0x122   : > { %p660_p9 = scmp.lt.s32.totalorder %s659_s14, 0  ;;  %s661_s6 = sceil.f32 %s659_s14 }
 0x123   : > { %s662_s7 = sfloor.f32 %s659_s14 }
 0x124   : > { %s1113_s6 = smov (!%p660_p9, %s661_s6), %s662_s7 }
 0x125   : > { %s664_s16 = scvt.f32.s32 %s1113_s6 }
 0x127   : > { %v434_v42 = vstv %s664_s16 }
 0x128   : > { %v435_v43 = vadd.s32 %v434_v42, %v420_v41 }
 0x12a   : > { %436 = vst.msk [vmem:[%s1059_s27] sm:$0x1] %vm381_vm1, %v435_v43 }
 0x12b PF: > { %s22_s23 = sadd.s32 1, %s872_s23   ;;  %s1103_s18 = smov %s856_s19 }
 0x12c   : > { %p19_p11 = scmp.ge.s32.totalorder %s22_s23, 4   ;;  %s1104_s19 = smov %s860_s20 }
 0x12d   : > { %s1105_s20 = smov %s958_s29  ;;  %s1106_s21 = smov %s868_s22 }
 0x12e   : > { %s1107_s22 = smov %s1109_s25  ;;  %21 = sbr.rel (!%p19_p11) target bundleno = 9 (0x9), region = 124 }
 0x133   :  { %491 = vsyncpa [#allocation3], 1 }
 0x134   :  { %493 = vsyncpa [#allocation3 + $0x1], 1 }
 0x135   :  { %494 = vsyncpa [#allocation5], 1 }
 0x136   :  { %496 = vsyncpa [#allocation5 + $0x1], 1 }

</bundles_post_ra>
